<compile_context>
chip_gen: v7x
topology: tpu7x:2x2x1
jax: 0.10.0
libtpu: 0.0.40
codegen_flags: <defaults>
</compile_context>

<pallas_src>
import numpy as np
import jax
import jax.numpy as jnp
from jax.experimental import pallas as pl
from jax.experimental.pallas import tpu as pltpu


# ---------------- Haar matrix construction (plain numpy glue) ----------------
def haar_1d_matrix(n):
    if np.log2(n) % 1 > 0:
        raise ValueError("n must be a power of 2")
    if n == 1:
        return np.array([[1]])
    H_next = haar_1d_matrix(n // 2)
    upper = np.kron(H_next, [1, 1])
    lower = np.kron(np.eye(len(H_next)), [1, -1])
    return np.vstack((upper, lower))


def haar_matrix(N):
    H = haar_1d_matrix(N).astype(np.float32)
    norms = np.linalg.norm(H, axis=1, keepdims=True)
    return jnp.asarray(H / norms, dtype=jnp.float32)


# ---------------- generation-aware tuning knobs -------------------------------
_GEN_PARAMS = {
    #         lane width    tile VMEM budget     scoped-VMEM cap
    "v5e": dict(lane=128, tile_budget=64 << 20, vmem_cap=96 << 20),
    "v6e": dict(lane=256, tile_budget=80 << 20, vmem_cap=96 << 20),
    "v7x": dict(lane=256, tile_budget=36 << 20, vmem_cap=48 << 20),
    None:  dict(lane=128, tile_budget=20 << 20, vmem_cap=32 << 20),
}


def _tpu_generation():
    try:
        kind = jax.devices()[0].device_kind.lower()
    except Exception:
        return None
    if "v5 lite" in kind or "v5e" in kind or "v5lite" in kind:
        return "v5e"
    if "v6" in kind:
        return "v6e"
    if "7" in kind:
        return "v7x"
    return None


def _gen_params():
    gen = _tpu_generation()
    p = dict(_GEN_PARAMS[gen if gen in _GEN_PARAMS else None])
    try:  # refine caps from the actual chip when the query is available
        phys = pltpu.get_tpu_info().vmem_capacity_bytes
        p["vmem_cap"] = min(p["vmem_cap"], int(0.75 * phys))
        p["tile_budget"] = min(p["tile_budget"], int(0.6 * phys))
    except Exception:
        pass
    return p


def _cdiv(a, b):
    return -(-a // b)


def _largest_divisor_leq(n, cap):
    cap = max(1, min(n, cap))
    for d in range(cap, 0, -1):
        if n % d == 0:
            return d
    return 1


# ---------------- Pallas kernel ----------------------------------------------
def _make_kernel(inv_tau, v_threshold, rows, chunk):
    n_chunks = rows // chunk

    def kernel(x_ref, hbd_hi_ref, hbd_lo_ref, htbd_ref, o_ref, mem1_ref, mem2_ref):
        # x_ref/o_ref : (rows, PN)      lane-packed slab for one timestep
        # hbd_*_ref   : (PN, PN)        kron(I_P, H) split into bf16 hi + lo
        # htbd_ref    : (chunk, chunk)  kron(I_{chunk/N}, H^T), bf16
        # mem*_ref    : persistent LIF state (VMEM scratch, survives step axis)
        t = pl.program_id(1)

        @pl.when(t == 0)
        def _():
            mem1_ref[...] = jnp.zeros_like(mem1_ref)
            mem2_ref[...] = jnp.zeros_like(mem2_ref)

        xt = x_ref[...]

        # --- row LIF: charge -> fire -> hard reset ----------------------------
        m1 = mem1_ref[...]
        m1 = m1 + (xt - m1) * inv_tau
        fire1 = m1 >= v_threshold
        s1 = jnp.where(fire1, 1.0, 0.0)
        mem1_ref[...] = jnp.where(fire1, 0.0, m1)

        # --- per-image row transform: s1 @ kron(I_P, H) ------------------------
        # split-bf16 (hi + lo) keeps ~f32 accuracy (result feeds a Heaviside)
        # at 2 MXU passes instead of 3+ for native f32.
        s1b = s1.astype(jnp.bfloat16)
        y = jnp.dot(s1b, hbd_hi_ref[...], preferred_element_type=jnp.float32)
        y = y + jnp.dot(s1b, hbd_lo_ref[...], preferred_element_type=jnp.float32)

        # --- col LIF ------------------------------------------------------------
        m2 = mem2_ref[...]
        m2 = m2 + (y - m2) * inv_tau
        fire2 = m2 >= v_threshold
        s2 = jnp.where(fire2, 1.0, 0.0)
        mem2_ref[...] = jnp.where(fire2, 0.0, m2)

        # --- per-image column transform: kron(I, H^T) @ s2 ----------------------
        # fixed (chunk, chunk) left block looped over row chunks: padded MXU work
        # stays O(rows*chunk).  Spikes are exact in bf16; ~1e-4 rounding of H^T
        # sits well inside the output tolerance.
        s2b = s2.astype(jnp.bfloat16)
        htbd = htbd_ref[...]
        for c in range(n_chunks):               # static, small
            lo = c * chunk
            o_ref[lo:lo + chunk, :] = jnp.dot(
                htbd, s2b[lo:lo + chunk, :], preferred_element_type=jnp.float32)

    return kernel


def haar2d_inverse(x, H, *, step=4, tau=2.0, v_threshold=1.0,
                   lane_target=None, g_tile=None):
    """x: (step*B, C, N, N) float32 (time-major NCHW, braincog layer_by_layer)."""
    TB, C, N, N2 = x.shape
    assert N == N2 and N >= 8 and (N & (N - 1)) == 0, "N must be a power of 2 >= 8"
    assert TB % step == 0, "leading dim must be step * batch"
    BC = (TB // step) * C
    x = x.astype(jnp.float32)
    H = H.astype(jnp.float32)

    params = _gen_params()
    if lane_target is None:
        lane_target = params["lane"]     # 256 on v6e/v7x (2x256^2 MXU), 128 on v5e
    lane_target = max(int(lane_target), 128)

    # ---- lane packing: P images share one lane group of width P*N >= 128 -----
    P = max(1, lane_target // N)
    PN = P * N
    G_needed = _cdiv(BC, P)

    # ---- tile the packed-group axis against a generation-aware VMEM budget ---
    if g_tile is None:
        per_g = 12 * N * PN * 4          # 2x2 in/out bufs + 2 state + ~6 live temps
        fixed = 2 * 2 * PN * PN * 2      # Hbd hi/lo (bf16, double-buffered)
        g_cap = max(1, (params["tile_budget"] - fixed) // per_g)
        if G_needed >= 2:                # keep >= 2 grid steps so both TCs get work
            g_cap = min(g_cap, _cdiv(G_needed, 2))
        g_tile = max(1, min(g_cap, G_needed))
    num_tiles = _cdiv(G_needed, g_tile)
    G = num_tiles * g_tile               # pad instead of degrading to tiny tiles
    BC_pad = G * P
    rows = g_tile * N

    # ---- pack (zero-padded extra images never spike; sliced away at the end) -
    xt = x.reshape(step, BC, N, N)
    if BC_pad > BC:
        xt = jnp.pad(xt, ((0, 0), (0, BC_pad - BC), (0, 0), (0, 0)))
    # TODO(synk): fold this pack/unpack permutation into the kernel (BlockSpec on
    # the original layout + in-kernel sublane shuffle) to drop one full HBM round
    # trip each way; it is the dominant leftover cost on HBM-bound v7x.
    xp = jnp.transpose(xt.reshape(step, G, P, N, N), (0, 1, 3, 2, 4))
    xp = xp.reshape(step, G * N, PN)

    # ---- block-diagonal Haar operators ----------------------------------------
    Hbd = jnp.kron(jnp.eye(P, dtype=jnp.float32), H)                     # (PN, PN)
    hbd_hi = Hbd.astype(jnp.bfloat16)
    hbd_lo = (Hbd - hbd_hi.astype(jnp.float32)).astype(jnp.bfloat16)
    d = _largest_divisor_leq(g_tile, max(1, lane_target // N))
    L = d * N                                                            # chunk rows
    htbd = jnp.kron(jnp.eye(d, dtype=jnp.float32), H.T).astype(jnp.bfloat16)

    # ---- VMEM + cost hints ------------------------------------------------------
    tile_bytes = rows * PN * 4
    vmem_need = (2 * 2 * tile_bytes          # double-buffered in + out blocks
                 + 2 * tile_bytes            # persistent mem1/mem2 scratch
                 + 6 * tile_bytes            # live temps (s1, y, s2, bf16 casts)
                 + 2 * 2 * PN * PN * 2       # Hbd hi/lo
                 + 2 * L * L * 2)            # Htbd block
    vmem_limit = int(min(params["vmem_cap"], max(16 << 20, 2 * vmem_need)))

    flops = int(num_tiles * step * (2 * 2 * rows * PN * PN + 2 * rows * L * PN))
    bytes_accessed = int(2 * step * G * N * PN * 4 + 2 * PN * PN * 2 + L * L * 2)

    kernel = _make_kernel(1.0 / tau, v_threshold, rows, L)
    out = pl.pallas_call(
        kernel,
        out_shape=jax.ShapeDtypeStruct((step, G * N, PN), jnp.float32),
        grid_spec=pltpu.PrefetchScalarGridSpec(
            num_scalar_prefetch=0,
            grid=(num_tiles, step),          # step innermost: sequential LIF recurrence
            in_specs=[
                pl.BlockSpec((None, rows, PN), lambda g, t: (t, g, 0)),
                pl.BlockSpec((PN, PN), lambda g, t: (0, 0)),
                pl.BlockSpec((PN, PN), lambda g, t: (0, 0)),
                pl.BlockSpec((L, L), lambda g, t: (0, 0)),
            ],
            out_specs=pl.BlockSpec((None, rows, PN), lambda g, t: (t, g, 0)),
            scratch_shapes=[pltpu.VMEM((rows, PN), jnp.float32),
                            pltpu.VMEM((rows, PN), jnp.float32)],
        ),
        compiler_params=pltpu.CompilerParams(
            dimension_semantics=("parallel", "arbitrary"),
            vmem_limit_bytes=vmem_limit,
        ),
        cost_estimate=pl.CostEstimate(
            flops=flops, transcendentals=0, bytes_accessed=bytes_accessed),
    )(xp, hbd_hi, hbd_lo, htbd)

    # ---- unpack back to (step*B, C, N, N) ---------------------------------------
    out = jnp.transpose(out.reshape(step, G, N, P, N), (0, 1, 3, 2, 4))
    out = out.reshape(step, BC_pad, N, N)[:, :BC].reshape(TB, C, N, N)
    return out


# ---------------- Pure-JAX reference (for correctness check) -----------------
def haar2d_inverse_ref(x, H, *, step=4, tau=2.0, v_threshold=1.0):
    TB, C, N, _ = x.shape
    BC = (TB // step) * C
    xt = x.reshape(step, BC, N, N).astype(jnp.float32)

    def lif(seq):
        mem = jnp.zeros(seq.shape[1:], jnp.float32)
        outs = []
        for t in range(step):
            mem = mem + (seq[t] - mem) / tau
            s = (mem >= v_threshold).astype(jnp.float32)
            mem = mem * (1.0 - s)
            outs.append(s)
        return jnp.stack(outs, axis=0)

    s1 = lif(xt)
    y = jnp.matmul(s1, H, precision=jax.lax.Precision.HIGHEST)
    s2 = lif(y)
    z = jnp.matmul(H.T, s2, precision=jax.lax.Precision.HIGHEST)
    return z.reshape(TB, C, N, N)


if __name__ == "__main__":
    T, B, C, N = 4, 2, 8, 16          # step=4 (time), batch=2, channels=8, 16x16
    key = jax.random.PRNGKey(0)
    x = 2.0 * jax.random.normal(key, (T * B, C, N, N), dtype=jnp.float32)
    H = haar_matrix(N)

    out = haar2d_inverse(x, H, step=T, tau=2.0, v_threshold=1.0)
    out = jax.block_until_ready(out)

    ref = haar2d_inverse_ref(x, H, step=T, tau=2.0, v_threshold=1.0)
    assert out.shape == (T * B, C, N, N)
    assert bool(jnp.all(jnp.isfinite(out)))
    max_err = float(jnp.max(jnp.abs(out - ref)))
    assert max_err < 1e-3, f"mismatch vs reference: max abs err {max_err}"

    print("KERNEL_OK")
</pallas_src>

<mosaic_0001>
module attributes {stable_mosaic.version = 11 : i64} {
  func.func @kernel(%arg0: i32, %arg1: i32, %arg2: memref<1x16x128xf32, #tpu.memory_space<vmem>>, %arg3: memref<128x128xbf16, #tpu.memory_space<vmem>>, %arg4: memref<128x128xbf16, #tpu.memory_space<vmem>>, %arg5: memref<16x16xbf16, #tpu.memory_space<vmem>>, %arg6: memref<1x16x128xf32, #tpu.memory_space<vmem>>, %arg7: memref<16x128xf32, #tpu.memory_space<vmem>>, %arg8: memref<16x128xf32, #tpu.memory_space<vmem>>) attributes {dimension_semantics = [#tpu.dimension_semantics<parallel>, #tpu.dimension_semantics<arbitrary>], iteration_bounds = array<i64: 2, 4>, scalar_prefetch = 0 : i64, scratch_operands = 2 : i64, tpu.core_type = #tpu.core_type<tc>, window_params = [{transform_indices = @transform_0, window_bounds = array<i64: 1, 16, 128>}, {pipeline_mode = #tpu.pipeline_mode<synchronous>, transform_indices = @transform_1, window_bounds = array<i64: 128, 128>}, {pipeline_mode = #tpu.pipeline_mode<synchronous>, transform_indices = @transform_2, window_bounds = array<i64: 128, 128>}, {pipeline_mode = #tpu.pipeline_mode<synchronous>, transform_indices = @transform_3, window_bounds = array<i64: 16, 16>}, {transform_indices = @transform_4, window_bounds = array<i64: 1, 16, 128>}]} {
    %c0_i32 = arith.constant 0 : i32
    %0 = arith.cmpi eq, %arg1, %c0_i32 : i32
    %1 = arith.extui %0 : i1 to i32
    %c0_i32_0 = arith.constant 0 : i32
    %2 = arith.cmpi ne, %1, %c0_i32_0 : i32
    scf.if %2 {
      %cst_32 = arith.constant 0.000000e+00 : f32
      %43 = vector.broadcast %cst_32 : f32 to vector<16x128xf32>
      %c0_33 = arith.constant 0 : index
      %c0_34 = arith.constant 0 : index
      %44 = vector.load %arg7[%c0_33, %c0_34] : memref<16x128xf32, #tpu.memory_space<vmem>>, vector<16x128xf32>
      tpu.vector_store %arg7[%c0_33, %c0_34], %43 {strides = array<i32>} : memref<16x128xf32, #tpu.memory_space<vmem>>, vector<16x128xf32>,
      %cst_35 = arith.constant 0.000000e+00 : f32
      %45 = vector.broadcast %cst_35 : f32 to vector<16x128xf32>
      %c0_36 = arith.constant 0 : index
      %c0_37 = arith.constant 0 : index
      %46 = vector.load %arg8[%c0_36, %c0_37] : memref<16x128xf32, #tpu.memory_space<vmem>>, vector<16x128xf32>
      tpu.vector_store %arg8[%c0_36, %c0_37], %45 {strides = array<i32>} : memref<16x128xf32, #tpu.memory_space<vmem>>, vector<16x128xf32>,
    } else {
    }
    %c0 = arith.constant 0 : index
    %c0_1 = arith.constant 0 : index
    %c0_2 = arith.constant 0 : index
    %3 = vector.load %arg2[%c0, %c0_1, %c0_2] : memref<1x16x128xf32, #tpu.memory_space<vmem>>, vector<1x16x128xf32>
    %4 = vector.shape_cast %3 : vector<1x16x128xf32> to vector<16x128xf32>
    %c0_3 = arith.constant 0 : index
    %c0_4 = arith.constant 0 : index
    %5 = vector.load %arg7[%c0_3, %c0_4] : memref<16x128xf32, #tpu.memory_space<vmem>>, vector<16x128xf32>
    %6 = arith.subf %4, %5 : vector<16x128xf32>
    %cst = arith.constant 5.000000e-01 : f32
    %7 = vector.broadcast %cst : f32 to vector<16x128xf32>
    %8 = arith.mulf %6, %7 : vector<16x128xf32>
    %9 = arith.addf %5, %8 : vector<16x128xf32>
    %cst_5 = arith.constant 1.000000e+00 : f32
    %10 = vector.broadcast %cst_5 : f32 to vector<16x128xf32>
    %11 = arith.cmpf oge, %9, %10 : vector<16x128xf32>
    %cst_6 = arith.constant 1.000000e+00 : f32
    %cst_7 = arith.constant 0.000000e+00 : f32
    %12 = vector.broadcast %cst_6 : f32 to vector<16x128xf32>
    %13 = vector.broadcast %cst_7 : f32 to vector<16x128xf32>
    %14 = arith.select %11, %12, %13 : vector<16x128xi1>, vector<16x128xf32>
    %cst_8 = arith.constant 0.000000e+00 : f32
    %15 = vector.broadcast %cst_8 : f32 to vector<16x128xf32>
    %16 = arith.select %11, %15, %9 : vector<16x128xi1>, vector<16x128xf32>
    %c0_9 = arith.constant 0 : index
    %c0_10 = arith.constant 0 : index
    %17 = vector.load %arg7[%c0_9, %c0_10] : memref<16x128xf32, #tpu.memory_space<vmem>>, vector<16x128xf32>
    tpu.vector_store %arg7[%c0_9, %c0_10], %16 {strides = array<i32>} : memref<16x128xf32, #tpu.memory_space<vmem>>, vector<16x128xf32>,
    %18 = arith.truncf %14 : vector<16x128xf32> to vector<16x128xbf16>
    %c0_11 = arith.constant 0 : index
    %c0_12 = arith.constant 0 : index
    %19 = vector.load %arg3[%c0_11, %c0_12] : memref<128x128xbf16, #tpu.memory_space<vmem>>, vector<128x128xbf16>
    %cst_13 = arith.constant dense<0.000000e+00> : vector<16x128xf32>
    %20 = tpu.matmul %18, %19, %cst_13 {dimension_numbers = #tpu.dot_dimension_numbers<[1], [0], [0], [1], [0, 0, 1, 1], [], []>} : vector<16x128xbf16>, vector<128x128xbf16>, vector<16x128xf32> -> vector<16x128xf32>
    %c0_14 = arith.constant 0 : index
    %c0_15 = arith.constant 0 : index
    %21 = vector.load %arg4[%c0_14, %c0_15] : memref<128x128xbf16, #tpu.memory_space<vmem>>, vector<128x128xbf16>
    %cst_16 = arith.constant dense<0.000000e+00> : vector<16x128xf32>
    %22 = tpu.matmul %18, %21, %cst_16 {dimension_numbers = #tpu.dot_dimension_numbers<[1], [0], [0], [1], [0, 0, 1, 1], [], []>} : vector<16x128xbf16>, vector<128x128xbf16>, vector<16x128xf32> -> vector<16x128xf32>
    %23 = arith.addf %20, %22 : vector<16x128xf32>
    %c0_17 = arith.constant 0 : index
    %c0_18 = arith.constant 0 : index
    %24 = vector.load %arg8[%c0_17, %c0_18] : memref<16x128xf32, #tpu.memory_space<vmem>>, vector<16x128xf32>
    %25 = arith.subf %23, %24 : vector<16x128xf32>
    %cst_19 = arith.constant 5.000000e-01 : f32
    %26 = vector.broadcast %cst_19 : f32 to vector<16x128xf32>
    %27 = arith.mulf %25, %26 : vector<16x128xf32>
    %28 = arith.addf %24, %27 : vector<16x128xf32>
    %cst_20 = arith.constant 1.000000e+00 : f32
    %29 = vector.broadcast %cst_20 : f32 to vector<16x128xf32>
    %30 = arith.cmpf oge, %28, %29 : vector<16x128xf32>
    %cst_21 = arith.constant 1.000000e+00 : f32
    %cst_22 = arith.constant 0.000000e+00 : f32
    %31 = vector.broadcast %cst_21 : f32 to vector<16x128xf32>
    %32 = vector.broadcast %cst_22 : f32 to vector<16x128xf32>
    %33 = arith.select %30, %31, %32 : vector<16x128xi1>, vector<16x128xf32>
    %cst_23 = arith.constant 0.000000e+00 : f32
    %34 = vector.broadcast %cst_23 : f32 to vector<16x128xf32>
    %35 = arith.select %30, %34, %28 : vector<16x128xi1>, vector<16x128xf32>
    %c0_24 = arith.constant 0 : index
    %c0_25 = arith.constant 0 : index
    %36 = vector.load %arg8[%c0_24, %c0_25] : memref<16x128xf32, #tpu.memory_space<vmem>>, vector<16x128xf32>
    tpu.vector_store %arg8[%c0_24, %c0_25], %35 {strides = array<i32>} : memref<16x128xf32, #tpu.memory_space<vmem>>, vector<16x128xf32>,
    %37 = arith.truncf %33 : vector<16x128xf32> to vector<16x128xbf16>
    %c0_26 = arith.constant 0 : index
    %c0_27 = arith.constant 0 : index
    %38 = vector.load %arg5[%c0_26, %c0_27] : memref<16x16xbf16, #tpu.memory_space<vmem>>, vector<16x16xbf16>
    %cst_28 = arith.constant dense<0.000000e+00> : vector<16x128xf32>
    %39 = tpu.matmul %38, %37, %cst_28 {dimension_numbers = #tpu.dot_dimension_numbers<[1], [0], [0], [1], [0, 0, 1, 1], [], []>} : vector<16x16xbf16>, vector<16x128xbf16>, vector<16x128xf32> -> vector<16x128xf32>
    %c0_29 = arith.constant 0 : index
    %c0_30 = arith.constant 0 : index
    %c0_31 = arith.constant 0 : index
    %40 = vector.load %arg6[%c0_29, %c0_30, %c0_31] : memref<1x16x128xf32, #tpu.memory_space<vmem>>, vector<1x16x128xf32>
    %41 = vector.shape_cast %40 : vector<1x16x128xf32> to vector<16x128xf32>
    %42 = vector.shape_cast %39 : vector<16x128xf32> to vector<1x16x128xf32>
    tpu.vector_store %arg6[%c0_29, %c0_30, %c0_31], %42 {strides = array<i32>} : memref<1x16x128xf32, #tpu.memory_space<vmem>>, vector<1x16x128xf32>,
    return
  }
  func.func @transform_0(%arg0: i32, %arg1: i32) -> (i32, i32, i32) {
    %c0_i32 = arith.constant 0 : i32
    %c0_i32_0 = arith.constant 0 : i32
    return %arg1, %arg0, %c0_i32 : i32, i32, i32
  }
  func.func @transform_1(%arg0: i32, %arg1: i32) -> (i32, i32) {
    %c0_i32 = arith.constant 0 : i32
    %c0_i32_0 = arith.constant 0 : i32
    %c0_i32_1 = arith.constant 0 : i32
    return %c0_i32, %c0_i32_0 : i32, i32
  }
  func.func @transform_2(%arg0: i32, %arg1: i32) -> (i32, i32) {
    %c0_i32 = arith.constant 0 : i32
    %c0_i32_0 = arith.constant 0 : i32
    %c0_i32_1 = arith.constant 0 : i32
    return %c0_i32, %c0_i32_0 : i32, i32
  }
  func.func @transform_3(%arg0: i32, %arg1: i32) -> (i32, i32) {
    %c0_i32 = arith.constant 0 : i32
    %c0_i32_0 = arith.constant 0 : i32
    %c0_i32_1 = arith.constant 0 : i32
    return %c0_i32, %c0_i32_0 : i32, i32
  }
  func.func @transform_4(%arg0: i32, %arg1: i32) -> (i32, i32, i32) {
    %c0_i32 = arith.constant 0 : i32
    %c0_i32_0 = arith.constant 0 : i32
    return %arg1, %arg0, %c0_i32 : i32, i32, i32
  }
}

</mosaic_0001>

<bundles_post_ra>
// kernel: tpu_custom_call.1
= control target key start
LH: loop header
LB: loop body
LE: loop exit
PB: predicated region body
PF: predicated region fallthrough
CT: control target
= control target key end

     0   :  { %s1480_s0 = inlined_call_operand.hbm [shape: f32[4,32,128], index: 0, kind: input, shape index: {}]   ;;  %s1481_s1 = inlined_call_operand.hbm [shape: bf16[128,128], index: 1, kind: input, shape index: {}]   ;;  %s1482_s2 = inlined_call_operand.hbm [shape: bf16[128,128], index: 2, kind: input, shape index: {}]   ;;  %s1483_s3 = inlined_call_operand.vmem [shape: bf16[16,16], index: 3, kind: input, shape index: {}]   ;;  %s1484_s4 = inlined_call_operand.hbm [shape: f32[4,32,128], index: 4, kind: output, shape index: {}]  }
   0x1   :  { %1493 = sst [smem:[#allocation17_spill]] %s1481_s1 }
   0x2   :  { %1494 = sst [smem:[#allocation18_spill]] %s1482_s2 }
   0x3   :  { %1495 = sst [smem:[#allocation19_spill]] %s1484_s4 }
   0x4   :  { %9 = vsyncpa [#allocation5], 0 }
   0x5   :  { %11 = vsyncpa [#allocation5 + $0x1], 0 }
   0x6   :  { %12 = vsyncpa [#allocation8], 0 }
   0x7   :  { %13 = vsyncpa [#allocation6], 0 }
   0x8   :  { %15 = vsyncpa [#allocation6 + $0x1], 0  ;;  %s1168_s15 = smov 0   ;;  %s1170_s16 = smov 0  }
   0x9   :  { %s1172_s17 = smov 0   ;;  %s1174_s18 = smov 0  }
   0xa   :  { %s1176_s19 = smov 0   ;;  %s1178_s20 = smov 0  }
   0xb   :  { %s1180_s21 = smov 0   ;;  %s1182_s22 = smov 0  }
   0xc LB: > { %1496 = sst [smem:[#allocation14_spill]] %s1099_s15  ;;  %s699_s23 = sadd.s32 4294967295, %s1127_s22   ;;  %s1127_s22 = sphi %s1182_s22, %s21_s22   ;;  %s1123_s21 = sphi %s1180_s21, %s1525_s21   ;;  %s1119_s20 = sphi %s1178_s20, %s1524_s20   ;;  %s1115_s19 = sphi %s1176_s19, %s1523_s19   ;;  %s1111_s18 = sphi %s1174_s18, %s1522_s18   ;;  %s1107_s17 = sphi %s1172_s17, %s1521_s17   ;;  %s1103_s16 = sphi %s1170_s16, %s1520_s16   ;;  %s1099_s15 = sphi %s1168_s15, %s1519_s15  }
   0xd   : > { %s700_s24 = sadd.s32 4294967294, %s1127_s22   ;;  %p55_p0 = scmp.ne.s32.totalorder %s1103_s16, %s1099_s15 }
   0xe   : > { %p1212_p1 = scmp.eq.s32.totalorder %s699_s23, 0  ;;  %p1216_p2 = scmp.eq.s32.totalorder %s699_s23, 7 }
   0xf   : > { %p150_p3 = scmp.eq.s32.totalorder %s700_s24, 7  ;;  %p701_p5 = scmp.ge.s32.totalorder %s1127_s22, 1 }
  0x10   : > { %s1497_s25 = scalar_select %p1212_p1, 1, 0 }
  0x11   : > { %s1498_s26 = scalar_select %p1216_p2, 1, 0 }
  0x12   : > { %p1222_p4 = por %p1212_p1, %p55_p0  ;;  %p1227_p6 = por %p150_p3, %p55_p0 }
  0x13   : > { %p157_p7 = scmp.lt.s32.totalorder %s1127_s22, 9  ;;  %s1129_s30 = smov [#allocation7]  }
  0x14   : > { %s1499_s27 = scalar_select %p1222_p4, 1, 0 }
  0x15   : > { %s1500_s28 = scalar_select %p1227_p6, 1, 0 }
  0x16   : > { %p1232_p8 = pnand %p701_p5, %p157_p7  ;;  %s169_s5 = sshll.u32 %s1129_s30, 4  ;;  %s170_s5 = int_to_ptr.vmem [resolvable:$true] %s169_s5 }
  0x17   : > { %1501 = sst [smem:[#allocation15_spill]] %s1500_s28  ;;  %s1130_s7 = smov [#allocation9]  }
  0x18   : > { %s1502_s29 = scalar_select %p1232_p8, 1, 0 }
  0x19   : > { %p825_p9 = pneg %p1232_p8  ;;  %s182_s8 = sshll.u32 %s1130_s7, 4  ;;  %s1244_s8 = int_to_ptr.vmem [resolvable:$true] %s182_s8 }
  0x1a   : > { %s1504_s1 = sld [smem:[#allocation17_spill]] }
  0x1b   : > { %p1240_p10 = pnand %p825_p9, %p1212_p1 }
  0x1d   : > { %p941_p12 = pneg %p1240_p10 }
  0x20   : > { %s939_s11 = scalar_lea.hbm %s1504_s1, 1024 }
  0x21   : > { %p940_p11 = scmp.ne.s32.totalorder %s1504_s1, %s939_s11  ;;  %p946_p3 = scmp.lt.u32.totalorder %s939_s11, %s1504_s1 }
  0x23   : > { %p942_p13 = pnand %p941_p12, %p940_p11 }
  0x25   : > { %p943_p0 = pneg %p942_p13 }
  0x27   : > { %p948_p5 = pnand %p946_p3, %p943_p0 }
  0x29   : > { %951 = shalt.err (!%p948_p5)
}
  0x2a   : > { %s952_s24 = scalar_lea.vmem %s170_s5, 1024  ;;  %p960_p1 = scmp.lt.s32.totalorder %s170_s5, %s170_s5 }
  0x2b   : > { %p953_p7 = scmp.ne.s32.totalorder %s170_s5, %s952_s24  ;;  %p961_p4 = scmp.lt.s32.totalorder %s952_s24, %s952_s24 }
  0x2d   : > { %p955_p9 = pnand %p953_p7, %p941_p12  ;;  %p962_p8 = por %p961_p4, %p960_p1 }
  0x2f   : > { %p956_p6 = pneg %p955_p9 }
  0x31   : > { %p963_p2 = pnand %p962_p8, %p956_p6 }
  0x33   : > { %966 = shalt.err (!%p963_p2)
}
  0x34   : > { %s1131_s30 = smov 64   ;;  %s1132_s7 = smov 4  }
  0x35   : > { %828 = dma.hbm_to_vmem [thread:$0]  (!%p1240_p10), %s1504_s1, 1024, %s170_s5, [#allocation8], %s1131_s30, %s1131_s30, %s1132_s7  }
  0x36   : > { %s1505_s2 = sld [smem:[#allocation18_spill]] }
  0x3c   : > { %s967_s13 = scalar_lea.hbm %s1505_s2, 1024 }
  0x3d   : > { %p968_p11 = scmp.ne.s32.totalorder %s1505_s2, %s967_s13  ;;  %p974_p4 = scmp.lt.u32.totalorder %s967_s13, %s1505_s2 }
  0x3f   : > { %p970_p1 = pnand %p968_p11, %p941_p12 }
  0x41   : > { %p971_p2 = pneg %p970_p1 }
  0x43   : > { %p976_p6 = pnand %p974_p4, %p971_p2 }
  0x45   : > { %979 = shalt.err (!%p976_p6)
}
  0x46   : > { %s980_s5 = scalar_lea.vmem %s1244_s8, 1024  ;;  %p988_p3 = scmp.lt.s32.totalorder %s1244_s8, %s1244_s8 }
  0x47   : > { %p981_p8 = scmp.ne.s32.totalorder %s1244_s8, %s980_s5  ;;  %p989_p5 = scmp.lt.s32.totalorder %s980_s5, %s980_s5 }
  0x49   : > { %p983_p13 = pnand %p981_p8, %p941_p12  ;;  %p990_p7 = por %p989_p5, %p988_p3 }
  0x4b   : > { %p984_p0 = pneg %p983_p13 }
  0x4d   : > { %p991_p9 = pnand %p990_p7, %p984_p0 }
  0x4f   : > { %994 = shalt.err (!%p991_p9)
}
  0x50   : > { %831 = dma.hbm_to_vmem [thread:$0]  (!%p1240_p10), %s1505_s2, 1024, %s1244_s8, [#allocation8], %s1131_s30, %s1131_s30, %s1132_s7  }
  0x51   : > { %s30_s10 = sadd.s32 1, %s1119_s20  ;;  %s33_s11 = sadd.s32 1, %s1123_s21 }
  0x52   : > { %p31_p12 = scmp.ge.s32.totalorder %s30_s10, 4  ;;  %s42_s6 = sadd.s32 1, %s1107_s17 }
  0x53   : > { %p49_p11 = scmp.ne.s32.totalorder %s1107_s17, %s1103_s16  ;;  %p50_p1 = scmp.eq.s32.totalorder %s1127_s22, 0 }
  0x54   : > { %s1527_s10 = smov (%p31_p12, %s30_s10), 0  ;;  %s1529_s11 = smov (!%p31_p12, %s33_s11), %s1123_s21 }
  0x55   : > { %1506 = sst [smem:[#allocation16_spill]] %s1527_s10  ;;  %s37_s12 = ssub.s32 %s1119_s20, %s1527_s10 }
  0x56   : > { %p1304_p2 = por %p50_p1, %p49_p11  ;;  %p35_p10 = scmp.ge.s32.totalorder %s1529_s11, 2 }
  0x57   : > { %p1508_p4 = scmp.ne.s32.totalorder %s1498_s26, 0  ;;  %p842_p8 = scmp.lt.s32.totalorder %s1127_s22, 8 }
  0x58   : > { %s199_s30 = sand.u32 1, %s1107_s17   ;;  %s1531_s11 = smov (%p35_p10, %s1529_s11), 0 }
  0x59   : > { %p1310_p6 = por %p1508_p4, %p49_p11  ;;  %s705_s7 = sshll.u32 %s199_s30, 4 }
  0x5a   : > { %s38_s14 = ssub.s32 %s1123_s21, %s1531_s11  ;;  %s706_s24 = sshll.u32 %s1123_s21, 1 }
  0x5b   : > { %s39_s23 = sor.u32 %s38_s14, %s37_s12  ;;  %s707_s5 = sshll.u32 %s1119_s20, 2 }
  0x5c   : > { %p40_p13 = scmp.eq.s32.totalorder %s39_s23, 0  ;;  %s209_s28 = sadd.s32 %s707_s5, %s706_s24 }
  0x5d   : > { %s203_s9 = scalar_lea.vmem [#allocation4], %s705_s7  ;;  %s708_s2 = sshll.u32 %s209_s28, 7 }
  0x5e   : > { %s212_s26 = sshll.u32 %s203_s9, 4  ;;  %s1330_s4 = scalar_lea.hbm %s1480_s0, %s708_s2  ;;  %s1325_s26 = int_to_ptr.vmem [resolvable:$true] %s212_s26 }
  0x5f   : > { %s1323_s1 = scalar_select %p40_p13, %s1107_s17, %s42_s6  }
  0x60   : > { %p1336_p0 = pnand %p842_p8, %p1304_p2  ;;  %s1340_s6 = scalar_lea.sflag [#allocation5], %s199_s30 }
  0x61   : > { %s995_s7 = scalar_lea.hbm %s1330_s4, 256  ;;  %s1000_s10 = scalar_lea.hbm %s1480_s0, 2048 }
  0x62   : > { %p996_p3 = scmp.ne.s32.totalorder %s1330_s4, %s995_s7  ;;  %p997_p5 = pneg %p1336_p0 }
  0x63   : > { %p1001_p12 = scmp.lt.u32.totalorder %s1330_s4, %s1480_s0  ;;  %p1002_p11 = scmp.lt.u32.totalorder %s1000_s10, %s995_s7 }
  0x64   : > { %p998_p7 = pnand %p997_p5, %p996_p3  ;;  %p1004_p2 = scmp.lt.u32.totalorder %s995_s7, %s1330_s4 }
  0x65   : > { %p1003_p1 = por %p1002_p11, %p1001_p12 }
  0x66   : > { %p999_p9 = pneg %p998_p7 }
  0x67   : > { %p1005_p10 = por %p1004_p2, %p1003_p1 }
  0x69   : > { %p1006_p4 = pnand %p1005_p10, %p999_p9 }
  0x6b   : > { %1009 = shalt.err (!%p1006_p4)
}
  0x6c   : > { %s1010_s30 = scalar_lea.vmem %s1325_s26, 256  ;;  %s1133_s23 = smov [#allocation4]  }
  0x6d   : > { %p1011_p8 = scmp.ne.s32.totalorder %s1325_s26, %s1010_s30  ;;  %s1015_s24 = sshll.u32 %s1133_s23, 4  ;;  %s1016_s24 = int_to_ptr.vmem [resolvable:$false] %s1015_s24 }
  0x6e   : > { %s1017_s5 = scalar_lea.vmem %s1016_s24, 512  ;;  %p1018_p7 = scmp.lt.s32.totalorder %s1325_s26, %s1016_s24 }
  0x6f   : > { %p1013_p13 = pnand %p1011_p8, %p997_p5  ;;  %p1019_p12 = scmp.lt.s32.totalorder %s1017_s5, %s1010_s30 }
  0x71   : > { %p1014_p3 = pneg %p1013_p13  ;;  %p1020_p11 = por %p1019_p12, %p1018_p7 }
  0x73   : > { %p1021_p1 = pnand %p1020_p11, %p1014_p3 }
  0x75   : > { %1024 = shalt.err (!%p1021_p1)
}
  0x76   : > { %s1134_s28 = smov 128   ;;  %s1135_s9 = smov 8  }
  0x77   : > { %835 = dma.hbm_to_vmem [thread:$0]  (!%p1336_p0), %s1330_s4, 256, %s1325_s26, %s1340_s6, %s1134_s28, %s1134_s28, %s1135_s9  }
  0x78   : > { %p1511_p5 = scmp.ne.s32.totalorder %s1502_s29, 0 }
  0x79   : > { %s1371_s7 = sand.u32 (!%p1511_p5), 1, %s1103_s16   ;;  %p1512_p9 = scmp.ne.s32.totalorder (!%p1511_p5), %s1499_s27, 0 }
  0x7a   : > { %224 = sbr.rel (%p1511_p5) target bundleno = 632 (0x278), region = 36  ;;  %s710_s2 = sshll.u32 (!%p1511_p5), %s1371_s7, 4 }
  0x7b   : > { %s227_s15 = scalar_lea.sflag (!%p1511_p5), [#allocation5], %s1371_s7  ;;  %s1375_s10 = scalar_lea.vmem (!%p1511_p5), [#allocation4], %s710_s2 }
  0x81   : > { %1086 = dma.done.wait (%p1512_p9), %s227_s15, 256  }
  0x82   : > { %1088 = vsyncadd (%p1512_p9), %s227_s15, 4294967040  ;;  %p1513_p0 = scmp.ne.s32.totalorder %s1497_s25, 0 }
  0x84   : > { %1090 = dma.done.wait (%p1513_p0), [#allocation8], 2048  }
  0x85   : > { %1092 = vsyncadd (%p1513_p0), [#allocation8], 4294965248  ;;  %s1385_s4 = scalar_lea.vmem [#allocation10], %s710_s2  ;;  %p714_p2 = scmp.ne.s32.totalorder %s1111_s18, 0 }
  0x86   : > { %v1136_v0 = vmov (!%p714_p2), 0.0  }
  0x87   : > { %269 = sbr.rel (%p714_p2) target bundleno = 142 (0x8e), region = 52  ;;  %270 = vst [vmem:[#allocation2] sm:$0xff] (!%p714_p2), %v1136_v0  ;;  %271 = vst [vmem:[#allocation2 + $0x8] sm:$0xff] (!%p714_p2), %v1136_v0 }
  0x88   : > { %272 = vst [vmem:[#allocation3] sm:$0xff] (!%p714_p2), %v1136_v0  ;;  %273 = vst [vmem:[#allocation3 + $0x8] sm:$0xff] (!%p714_p2), %v1136_v0 }
  0x8e PF: > { %v922_v1 = vld [vmem:[#allocation9] sm:$0xff]   ;;  %v1137_v2 = vmov 0.0   ;;  %v924_v4 = vld [vmem:[#allocation9 + $0x8] sm:$0xff]   ;;  %vm1138_vm0 = vmmov 0   ;;  %v926_v6 = vld [vmem:[#allocation9 + $0x10] sm:$0xff]   ;;  %vm527_vm7 = vcmask 130048  }
  0x8f   : > { %765 = vmatprep.subr.bf16.mxu1 %v1137_v2  ;;  %785 = vmatprep.subr.bf16.mxu0 %v1137_v2  ;;  %v923_v3 = vld [vmem:[#allocation7] sm:$0xff]   ;;  %v925_v5 = vld [vmem:[#allocation7 + $0x8] sm:$0xff]   ;;  %v927_v7 = vld [vmem:[#allocation7 + $0x10] sm:$0xff]   ;;  %v1139_v30 = vmov 1.0|1.0   ;;  %s740_s29 = sshll.u32 %s1115_s19, 1 }
  0x90   : > { %766 = vmatpush3.bf16.msra.mxu1 %v922_v1  ;;  %781 = vmatprep.mubr.msk.bf16.mxu1 %vm1138_vm0, %v1137_v2  ;;  %v928_v8 = vld [vmem:[#allocation9 + $0x18] sm:$0xff]   ;;  %v930_v10 = vld [vmem:[#allocation9 + $0x20] sm:$0xff]   ;;  %v277_v15 = vld [vmem:[#allocation2 + $0x8] sm:$0xff]  ;;  %s741_s26 = sshll.u32 %s1111_s18, 2  ;;  %s590_s13 = sshll.u32 %s1385_s4, 4  ;;  %s1424_s13 = int_to_ptr.vmem [resolvable:$true] %s590_s13 }
  0x91   : > { %786 = vmatpush3.bf16.msra.mxu0 %v923_v3  ;;  %767 = vmatprep.subr.bf16.mxu1 %v1137_v2  ;;  %v929_v9 = vld [vmem:[#allocation7 + $0x18] sm:$0xff]   ;;  %v931_v11 = vld [vmem:[#allocation7 + $0x20] sm:$0xff]   ;;  %v932_v17 = vld [vmem:[#allocation9 + $0x28] sm:$0xff]   ;;  %s587_s12 = sadd.s32 %s741_s26, %s740_s29  ;;  %s1514_s23 = sld [smem:[#allocation19_spill]] }
  0x92   : > { %787 = vmatprep.subr.bf16.mxu0 %v1137_v2  ;;  %801 = vmatprep.mubr.msk.bf16.mxu0 %vm1138_vm0, %v1137_v2  ;;  %v274_v12 = vld [vmem:[%s1375_s10] sm:$0xff]  ;;  %v275_v13 = vld [vmem:[%s1375_s10 + $0x8] sm:$0xff]  ;;  %s742_s6 = sshll.u32 %s587_s12, 7  ;;  %s575_s18 = scalar_lea.sflag [#allocation6], %s1371_s7 }
  0x93   : > { %v276_v14 = vld [vmem:[#allocation2] sm:$0xff]  ;;  %v279_v18 = vsub.f32 %v275_v13, %v277_v15  ;;  %v933_v19 = vld [vmem:[#allocation7 + $0x28] sm:$0xff]   ;;  %v934_v23 = vld [vmem:[#allocation9 + $0x30] sm:$0xff]   ;;  %s1025_s19 = scalar_lea.vmem %s1424_s13, 256  ;;  %s1140_s5 = smov [#allocation10]  }
  0x94   : > { %768 = vmatpush3.bf16.msra.mxu1 %v924_v4  ;;  %v278_v16 = vsub.f32 %v274_v12, %v276_v14  ;;  %v935_v25 = vld [vmem:[#allocation7 + $0x30] sm:$0xff]   ;;  %v936_v28 = vld [vmem:[#allocation9 + $0x38] sm:$0xff]   ;;  %v938_v51 = vld [vmem:[%s1483_s3] sm:$0xff]   ;;  %p1026_p10 = scmp.ne.s32.totalorder %s1424_s13, %s1025_s19  ;;  %s1029_s28 = sshll.u32 %s1140_s5, 4  ;;  %s1030_s28 = int_to_ptr.vmem [resolvable:$false] %s1029_s28 }
  0x95   : > { %788 = vmatpush3.bf16.msra.mxu0 %v925_v5  ;;  %769 = vmatprep.subr.bf16.mxu1 %v1137_v2  ;;  %v281_v21 = vmul.f32 0.5, %v279_v18  ;;  %v937_v29 = vld [vmem:[#allocation7 + $0x38] sm:$0xff]   ;;  %v503_v33 = vld [vmem:[#allocation3] sm:$0xff]  ;;  %s1031_s9 = scalar_lea.vmem %s1030_s28, 512  ;;  %p1032_p13 = scmp.lt.s32.totalorder %s1424_s13, %s1030_s28 }
  0x96   : > { %789 = vmatprep.subr.bf16.mxu0 %v1137_v2  ;;  %v280_v20 = vmul.f32 0.5, %v278_v16  ;;  %v504_v39 = vld [vmem:[#allocation3 + $0x8] sm:$0xff]  ;;  %p1027_p4 = pnand %p1026_p10, %p1310_p6  ;;  %p1033_p3 = scmp.lt.s32.totalorder %s1031_s9, %s1025_s19 }
  0x97   : > { %v283_v24 = vadd.f32 %v281_v21, %v277_v15  ;;  %s1422_s24 = scalar_lea.hbm %s1514_s23, %s742_s6 }
  0x98   : > { %770 = vmatpush3.bf16.msra.mxu1 %v926_v6  ;;  %v282_v22 = vadd.f32 %v280_v20, %v276_v14  ;;  %p1028_p8 = pneg %p1027_p4  ;;  %p1034_p7 = por %p1033_p3, %p1032_p13 }
  0x99   : > { %790 = vmatpush3.bf16.msra.mxu0 %v927_v7  ;;  %771 = vmatprep.subr.bf16.mxu1 %v1137_v2  ;;  %vm285_vm2 = vcmp.ge.f32.partialorder %v283_v24, 1.0 }
  0x9a   : > { %791 = vmatprep.subr.bf16.mxu0 %v1137_v2  ;;  %vm284_vm1 = vcmp.ge.f32.partialorder %v282_v22, 1.0  ;;  %v289_v27 = vsel %vm285_vm2, 0.0, %v283_v24  ;;  %p1035_p12 = pnand %p1034_p7, %p1028_p8 }
  0x9b   : > { %v288_v26 = vsel %vm284_vm1, 0.0, %v282_v22  ;;  %291 = vst [vmem:[#allocation2 + $0x8] sm:$0xff] %v289_v27  ;;  %vm723_vm3 = vmpackc.low %vm285_vm2, %vm284_vm1 }
  0x9c   : > { %772 = vmatpush3.bf16.msra.mxu1 %v928_v8  ;;  %290 = vst [vmem:[#allocation2] sm:$0xff] %v288_v26 }
  0x9d   : > { %792 = vmatpush3.bf16.msra.mxu0 %v929_v9  ;;  %773 = vmatprep.subr.bf16.mxu1 %v1137_v2 }
  0x9e   : > { %793 = vmatprep.subr.bf16.mxu0 %v1137_v2 }
  0xa0   : > { %774 = vmatpush3.bf16.msra.mxu1 %v930_v10 }
  0xa1   : > { %794 = vmatpush3.bf16.msra.mxu0 %v931_v11  ;;  %775 = vmatprep.subr.bf16.mxu1 %v1137_v2 }
  0xa2   : > { %795 = vmatprep.subr.bf16.mxu0 %v1137_v2 }
  0xa4   : > { %776 = vmatpush3.bf16.msra.mxu1 %v932_v17 }
  0xa5   : > { %796 = vmatpush3.bf16.msra.mxu0 %v933_v19  ;;  %777 = vmatprep.subr.bf16.mxu1 %v1137_v2 }
  0xa6   : > { %797 = vmatprep.subr.bf16.mxu0 %v1137_v2 }
  0xa8   : > { %778 = vmatpush3.bf16.msra.mxu1 %v934_v23 }
  0xa9   : > { %798 = vmatpush3.bf16.msra.mxu0 %v935_v25  ;;  %779 = vmatprep.subr.bf16.mxu1 %v1137_v2 }
  0xaa   : > { %799 = vmatprep.subr.bf16.mxu0 %v1137_v2 }
  0xac   : > { %780 = vmatpush3.bf16.msra.mxu1 %v936_v28 }
  0xad   : > { %800 = vmatpush3.bf16.msra.mxu0 %v937_v29  ;;  %805 = vmatprep.subr.bf16.mxu1 %v1137_v2 }
  0xaf   : > { %782 = vmatmul.mubr.msk.bf16.vlgmr.msra.gmra.mrb[0].mxu1 %vm723_vm3, %v1139_v30 }
  0xb0   : > { %802 = vmatmul.mubr.msk.bf16.vlgmr.msra.gmra.mrb[0].mxu0 %vm723_vm3, %v1139_v30  ;;  %807 = vmatprep.mubr.msk.bf16.mxu1 %vm1138_vm0, %v1137_v2 }
 0x182   : > { %v407_v31 = vpop.f32.mrb[0].mxu1 }
 0x183   : > { %v496_v32 = vpop.f32.mrb[0].mxu0  ;;  %v783_v34 = vpop.f32.mrb[1].mxu1 }
 0x184   : > { %v497_v35 = vadd.f32 %v496_v32, %v407_v31  ;;  %v803_v36 = vpop.f32.mrb[1].mxu0  ;;  %v410_v37 = vpop.f32.mrb[2].mxu1 }
 0x185   : > { %v499_v38 = vpop.f32.mrb[2].mxu0  ;;  %v784_v40 = vpop.f32.mrb[3].mxu1 }
 0x186   : > { %v505_v41 = vsub.f32 %v497_v35, %v503_v33  ;;  %v500_v42 = vadd.f32 %v499_v38, %v410_v37  ;;  %v804_v43 = vpop.f32.mrb[3].mxu0 }
 0x188   : > { %v507_v44 = vmul.f32 0.5, %v505_v41  ;;  %v506_v45 = vsub.f32 %v500_v42, %v504_v39 }
 0x18a   : > { %v509_v46 = vadd.f32 %v507_v44, %v503_v33  ;;  %v508_v47 = vmul.f32 0.5, %v506_v45 }
 0x18c   : > { %v510_v48 = vadd.f32 %v508_v47, %v504_v39  ;;  %vm511_vm4 = vcmp.ge.f32.partialorder %v509_v46, 1.0 }
 0x18d   : > { %v515_v49 = vsel %vm511_vm4, 0.0, %v509_v46 }
 0x18e   : > { %vm512_vm5 = vcmp.ge.f32.partialorder %v510_v48, 1.0  ;;  %517 = vst [vmem:[#allocation3] sm:$0xff] %v515_v49 }
 0x18f   : > { %v516_v50 = vsel %vm512_vm5, 0.0, %v510_v48  ;;  %vm736_vm6 = vmpackc.low %vm512_vm5, %vm511_vm4 }
 0x190   : > { %518 = vst [vmem:[#allocation3 + $0x8] sm:$0xff] %v516_v50  ;;  %806 = vmatpush3.bf16.msk.msra.mxu1 %vm736_vm6, %v1139_v30 }
 0x193   : > { %808 = vmatmul.mubr.msk.bf16.vlgmr.msra.gmra.mrb[4].mxu1 %vm527_vm7, %v938_v51 }
 0x266   : > { %v565_v52 = vpop.f32.mrb[4].mxu1 }
 0x267   : > { %572 = vst [vmem:[%s1385_s4] sm:$0xff] %v565_v52  ;;  %v809_v53 = vpop.f32.mrb[5].mxu1 }
 0x268   : > { %v568_v54 = vpop.f32.mrb[6].mxu1 }
 0x269   : > { %573 = vst [vmem:[%s1385_s4 + $0x8] sm:$0xff] %v568_v54  ;;  %v810_v55 = vpop.f32.mrb[7].mxu1 }
 0x26a   : > { %1038 = shalt.err (!%p1035_p12)
}
 0x26b   : > { %s1039_s2 = scalar_lea.hbm %s1422_s24, 256  ;;  %s1043_s4 = scalar_lea.hbm %s1514_s23, 2048 }
 0x26c   : > { %p1040_p11 = scmp.ne.s32.totalorder %s1422_s24, %s1039_s2  ;;  %p1044_p9 = scmp.lt.u32.totalorder %s1422_s24, %s1514_s23 }
 0x26d   : > { %p1045_p0 = scmp.lt.u32.totalorder %s1043_s4, %s1039_s2  ;;  %p1047_p10 = scmp.lt.u32.totalorder %s1039_s2, %s1422_s24 }
 0x26e   : > { %p1041_p1 = pnand %p1040_p11, %p1310_p6 }
 0x26f   : > { %p1046_p2 = por %p1045_p0, %p1044_p9 }
 0x270   : > { %p1042_p5 = pneg %p1041_p1 }
 0x271   : > { %p1048_p4 = por %p1047_p10, %p1046_p2 }
 0x273   : > { %p1049_p8 = pnand %p1048_p4, %p1042_p5 }
 0x275   : > { %1052 = shalt.err (!%p1049_p8)
}
 0x276   : > { %s1141_s29 = smov 128   ;;  %s1142_s26 = smov 8  }
 0x277   : > { %823 = dma.vmem_to_hbm [thread:$0]  (%p1310_p6), %s1424_s13, 256, %s1422_s24, %s575_s18, %s1141_s29, %s1141_s29, %s1142_s26  }
 0x278 PF: > { %s1515_s12 = sld [smem:[#allocation14_spill]]  ;;  %s1516_s6 = sld [smem:[#allocation15_spill]] }
 0x279   : > { %p845_p13 = scmp.ge.s32.totalorder %s1127_s22, 2 }
 0x27e   : > { %s605_s14 = sand.u32 1, %s1515_s12   ;;  %p1517_p3 = scmp.ne.s32.totalorder %s1516_s6, 0 }
 0x27f   : > { %s606_s30 = scalar_lea.sflag [#allocation6], %s605_s14 }
 0x280   : > { %p837_p7 = pnand %p845_p13, %p1517_p3 }
 0x282   : > { %1094 = dma.done.wait (!%p837_p7), %s606_s30, 256  }
 0x283   : > { %1096 = vsyncadd (!%p837_p7), %s606_s30, 4294967040  ;;  %s21_s22 = sadd.s32 1, %s1127_s22   ;;  %s1518_s8 = sld [smem:[#allocation16_spill]] }
 0x284   : > { %p18_p12 = scmp.ge.s32.totalorder %s21_s22, 10   ;;  %s1519_s15 = smov %s1103_s16 }
 0x285   : > { %s1520_s16 = smov %s1107_s17  ;;  %s1521_s17 = smov %s1323_s1 }
 0x286   : > { %s1522_s18 = smov %s1119_s20  ;;  %s1523_s19 = smov %s1123_s21 }
 0x287   : > { %s1525_s21 = smov %s1531_s11  ;;  %20 = sbr.rel (!%p18_p12) target bundleno = 12 (0xc), region = 93 }
 0x289   : > { %s1524_s20 = smov %s1518_s8 }
 0x28e   :  { %611 = vsyncpa [#allocation5], 1 }
 0x28f   :  { %613 = vsyncpa [#allocation5 + $0x1], 1 }
 0x290   :  { %614 = vsyncpa [#allocation8], 1 }
 0x291   :  { %615 = vsyncpa [#allocation6], 1 }
 0x292   :  { %617 = vsyncpa [#allocation6 + $0x1], 1 }

</bundles_post_ra>
